<compile_context>
chip_gen: v7x
topology: tpu7x:2x2x1
jax: 0.10.0
libtpu: 0.0.40
codegen_flags: <defaults>
</compile_context>

<pallas_src>
import functools

import jax
import jax.numpy as jnp
from jax.experimental import pallas as pl
from jax.experimental.pallas import tpu as pltpu


def _round_up(x, m):
    return ((x + m - 1) // m) * m


def _cdiv(a, b):
    return -(-a // b)


@functools.lru_cache(maxsize=None)
def _vmem_budget_bytes():
    # 3/4 of physical VMEM: 96 MiB on v5e/v6e (128 MiB), 48 MiB on v7x (64 MiB).
    try:
        cap = int(pltpu.get_tpu_info().vmem_capacity_bytes)
    except Exception:
        cap = 64 * 1024 * 1024  # conservative fallback (v7x per-TC size)
    return (cap // 4) * 3


def _plan_tiles(N, H, W, C, compute_dtype, tile_h):
    """Static (host-side) tile planning: row-tile height, padded dims, VMEM budget."""
    itemsize = jnp.dtype(compute_dtype).itemsize
    w_mult = max(8, 32 // itemsize)          # 8 for f32, 16 for bf16 (layout-preserving flatten)
    Wp = _round_up(W + 2, w_mult)            # data in cols 1..W, zero border cols in HBM
    budget = _vmem_budget_bytes()
    if tile_h is None:
        # Per-step VMEM ~ (2 in + 2 out + acc + lhs temporaries) ~ <=14 tile-equivalents.
        row_bytes = Wp * C * itemsize
        TH = max(1, (budget // 14) // row_bytes)
        TH = min(TH, H)
        # Keep at least 2 grid steps when possible (v7x has 2 TensorCores).
        if N * _cdiv(H, TH) < 2 and H >= 2:
            TH = _cdiv(H, 2)
    else:
        TH = max(1, min(int(tile_h), H))
    nh = _cdiv(H, TH)
    Hp = nh * TH
    return TH, Hp, Wp, budget


def _make_kernel(TH, Wp, C):
    R = TH * Wp

    def _shift_rows(rows, up):
        # up=True  -> result[p] = rows[p-1]  (kw=0 tap, wraps into a zero border column)
        # up=False -> result[p] = rows[p+1]  (kw=2 tap, wraps into a zero border column)
        r = rows.shape[0]
        if rows.dtype.itemsize == 4:
            return pltpu.roll(rows, 1 if up else r - 1, 0)
        # Packed sub-32-bit dtypes: use an explicit wrap-around concat (identical
        # result); avoids relying on packed sublane rotates.
        if up:
            return jnp.concatenate([rows[r - 1:], rows[: r - 1]], axis=0)
        return jnp.concatenate([rows[1:], rows[:1]], axis=0)

    def _fused_lhs(rows):
        # rows: (r, C) -> (r, 3C) = [x(j-1) | x(j) | x(j+1)]  (kw = 0, 1, 2 slabs).
        return jnp.concatenate(
            [_shift_rows(rows, True), rows, _shift_rows(rows, False)], axis=-1)

    def kernel(x_ref, top_ref, bot_ref, w_ref, b_ref, o_ref, acc_ref):
        # x_ref:   (1, TH, Wp, C)  main row tile (zero border columns from HBM pad)
        # top_ref: (1, 1, Wp, C)   row just above the tile (clamped fetch)
        # bot_ref: (1, 1, Wp, C)   row just below the tile (clamped fetch)
        # w_ref:   (3, 3C, C)      per-kh fused weights, row index = kw*C + c_in
        # b_ref:   (1, C)          bias (f32)
        # o_ref:   (1, TH, Wp, C)
        # acc_ref: (TH*Wp, C)      f32 accumulator scratch
        h = pl.program_id(1)
        nh = pl.num_programs(1)

        mid = x_ref[0].reshape(R, C)           # layout-preserving (Wp multiple of 8/16)
        lhs = _fused_lhs(mid)                  # (R, 3C)

        # kh = 1 (same row) over the whole tile: initializes the accumulator.
        acc_ref[...] = jnp.dot(lhs, w_ref[1], preferred_element_type=jnp.float32)

        if TH > 1:
            # kh = 0 (row above): output rows 1..TH-1 read tile rows 0..TH-2.
            acc_ref[pl.ds(Wp, R - Wp), :] += jnp.dot(
                lhs[: R - Wp], w_ref[0], preferred_element_type=jnp.float32)
            # kh = 2 (row below): output rows 0..TH-2 read tile rows 1..TH-1.
            acc_ref[pl.ds(0, R - Wp), :] += jnp.dot(
                lhs[Wp:], w_ref[2], preferred_element_type=jnp.float32)

        # Halo-row contributions only where the neighbouring row exists
        # (skipping them at the image border implements the conv zero padding).
        @pl.when(h > 0)
        def _top_halo():
            tlhs = _fused_lhs(top_ref[0, 0])   # (Wp, 3C)
            acc_ref[pl.ds(0, Wp), :] += jnp.dot(
                tlhs, w_ref[0], preferred_element_type=jnp.float32)

        @pl.when(h < nh - 1)
        def _bot_halo():
            blhs = _fused_lhs(bot_ref[0, 0])
            acc_ref[pl.ds(R - Wp, Wp), :] += jnp.dot(
                blhs, w_ref[2], preferred_element_type=jnp.float32)

        out = jnp.maximum(acc_ref[...] + b_ref[...], 0.0)
        o_ref[0, ...] = out.reshape(TH, Wp, C).astype(o_ref.dtype)

    return kernel


@functools.partial(
    jax.jit, static_argnames=("compute_dtype", "TH", "Hp", "Wp", "vmem_limit"))
def _rpn_conv_single(x_nchw, w_fused, bias, *, compute_dtype, TH, Hp, Wp, vmem_limit):
    N, C, H, W = x_nchw.shape
    nh = Hp // TH
    cdtype = jnp.dtype(compute_dtype)
    out_dtype = x_nchw.dtype

    # NCHW -> NHWC (channels on lanes), cast, then pad so the image occupies
    # rows 0..H-1 and columns 1..W (zero border columns => in-kernel width
    # rolls wrap into zeros; zero bottom rows => halo fetches stay correct).
    x = jnp.transpose(x_nchw.astype(cdtype), (0, 2, 3, 1))
    x = jnp.pad(x, ((0, 0), (0, Hp - H), (1, Wp - W - 1), (0, 0)))

    kernel = _make_kernel(TH, Wp, C)

    main_spec = pl.BlockSpec((1, TH, Wp, C), lambda n, h: (n, h, 0, 0))
    # 1-row halo blocks with clamped row indices (block height 1 => block index
    # == row index).  Out-of-image rows are simply not used (pl.when in-kernel).
    top_spec = pl.BlockSpec(
        (1, 1, Wp, C), lambda n, h: (n, jnp.maximum(h * TH - 1, 0), 0, 0))
    bot_spec = pl.BlockSpec(
        (1, 1, Wp, C), lambda n, h: (n, jnp.minimum(h * TH + TH, Hp - 1), 0, 0))
    w_spec = pl.BlockSpec((3, 3 * C, C), lambda n, h: (0, 0, 0))
    b_spec = pl.BlockSpec((1, C), lambda n, h: (0, 0))
    out_spec = pl.BlockSpec((1, TH, Wp, C), lambda n, h: (n, h, 0, 0))

    out = pl.pallas_call(
        kernel,
        out_shape=jax.ShapeDtypeStruct((N, Hp, Wp, C), out_dtype),
        grid_spec=pltpu.PrefetchScalarGridSpec(
            num_scalar_prefetch=0,
            grid=(N, nh),
            in_specs=[main_spec, top_spec, bot_spec, w_spec, b_spec],
            out_specs=out_spec,
            scratch_shapes=[pltpu.VMEM((TH * Wp, C), jnp.float32)],
        ),
        compiler_params=pltpu.CompilerParams(
            dimension_semantics=("parallel", "parallel"),
            vmem_limit_bytes=int(vmem_limit),
        ),
    )(x, x, x, w_fused.astype(cdtype), bias)

    out = out[:, :H, 1:W + 1, :]                # drop pad rows / border columns
    return jnp.transpose(out, (0, 3, 1, 2))     # back to NCHW


class RPNHeadFeatureSingleConvPallas:
    """JAX/Pallas port of RPNHeadFeatureSingleConv (3x3 conv + ReLU per level)."""

    def __init__(self, in_channels, key, compute_dtype=jnp.float32, tile_h=None):
        # nn.Conv2d weight shape (C_out, C_in, 3, 3), init normal(std=0.01), bias 0.
        w = 0.01 * jax.random.normal(
            key, (in_channels, in_channels, 3, 3), dtype=jnp.float32)
        self.w_nchw = w  # kept for the reference check
        # (3, 3*C_in, C_out): per-kh fused weights, row index = kw*C_in + c_in.
        self.w_fused = jnp.transpose(w, (2, 3, 1, 0)).reshape(
            3, 3 * in_channels, in_channels).astype(compute_dtype)
        self.bias = jnp.zeros((1, in_channels), dtype=jnp.float32)
        self.out_channels = in_channels
        self.compute_dtype = compute_dtype
        self.tile_h = tile_h

    def __call__(self, x):
        assert isinstance(x, (list, tuple))
        outs = []
        for z in x:
            N, C, H, W = z.shape
            TH, Hp, Wp, budget = _plan_tiles(
                N, H, W, C, self.compute_dtype, self.tile_h)
            outs.append(_rpn_conv_single(
                z, self.w_fused, self.bias,
                compute_dtype=self.compute_dtype,
                TH=TH, Hp=Hp, Wp=Wp, vmem_limit=budget))
        return outs


def _reference(x_nchw, w_nchw, bias_vec, compute_dtype=jnp.float32):
    xc = x_nchw.astype(compute_dtype)
    wc = w_nchw.astype(compute_dtype)
    out = jax.lax.conv_general_dilated(
        xc, wc, window_strides=(1, 1), padding=((1, 1), (1, 1)),
        dimension_numbers=("NCHW", "OIHW", "NCHW"),
        preferred_element_type=jnp.float32)
    out = out + bias_vec[None, :, None, None]
    return jnp.maximum(out, 0.0).astype(x_nchw.dtype)


if __name__ == "__main__":
    key = jax.random.PRNGKey(0)
    k_w, k_x0, k_x1 = jax.random.split(key, 3)

    N, C = 2, 4
    # Two "FPN levels": one nicely aligned, one with odd H/W to exercise padding.
    x0 = jax.random.normal(k_x0, (N, C, 16, 16), dtype=jnp.float32)
    x1 = jax.random.normal(k_x1, (N, C, 13, 10), dtype=jnp.float32)
    feats = [x0, x1]

    # f32 path, small forced row tile so multi-tile halo handling is exercised.
    head = RPNHeadFeatureSingleConvPallas(C, k_w, tile_h=4)
    outs = [jax.block_until_ready(o) for o in head(feats)]
    for z, o in zip(feats, outs):
        ref = _reference(z, head.w_nchw, head.bias[0])
        assert o.shape == z.shape and o.dtype == z.dtype
        assert jnp.allclose(o, ref, atol=1e-5, rtol=1e-5), "f32 mismatch vs reference"

    # Auto tile size (single tile per image at these small shapes).
    head_auto = RPNHeadFeatureSingleConvPallas(C, k_w)
    o_auto = jax.block_until_ready(head_auto([x0])[0])
    assert jnp.allclose(o_auto, _reference(x0, head.w_nchw, head.bias[0]),
                        atol=1e-5, rtol=1e-5), "auto-tile mismatch vs reference"

    # bf16 compute path (f32 MXU accumulation), compared to a bf16 reference.
    head_bf16 = RPNHeadFeatureSingleConvPallas(
        C, k_w, compute_dtype=jnp.bfloat16, tile_h=4)
    outs16 = [jax.block_until_ready(o) for o in head_bf16(feats)]
    for z, o in zip(feats, outs16):
        ref = _reference(z, head.w_nchw, head.bias[0], compute_dtype=jnp.bfloat16)
        assert jnp.allclose(o, ref, atol=1e-2, rtol=1e-2), "bf16 mismatch vs reference"

    print("KERNEL_OK")
</pallas_src>

<mosaic_0001>
module attributes {stable_mosaic.version = 11 : i64} {
  func.func @kernel(%arg0: i32, %arg1: i32, %arg2: memref<1x4x24x4xf32, #tpu.memory_space<vmem>>, %arg3: memref<1x1x24x4xf32, #tpu.memory_space<vmem>>, %arg4: memref<1x1x24x4xf32, #tpu.memory_space<vmem>>, %arg5: memref<3x12x4xf32, #tpu.memory_space<vmem>>, %arg6: memref<1x4xf32, #tpu.memory_space<vmem>>, %arg7: memref<1x4x24x4xf32, #tpu.memory_space<vmem>>, %arg8: memref<96x4xf32, #tpu.memory_space<vmem>>) attributes {dimension_semantics = [#tpu.dimension_semantics<parallel>, #tpu.dimension_semantics<parallel>], iteration_bounds = array<i64: 2, 4>, scalar_prefetch = 0 : i64, scratch_operands = 1 : i64, tpu.core_type = #tpu.core_type<tc>, window_params = [{transform_indices = @transform_0, window_bounds = array<i64: 1, 4, 24, 4>}, {transform_indices = @transform_1, window_bounds = array<i64: 1, 1, 24, 4>}, {transform_indices = @transform_2, window_bounds = array<i64: 1, 1, 24, 4>}, {pipeline_mode = #tpu.pipeline_mode<synchronous>, transform_indices = @transform_3, window_bounds = array<i64: 3, 12, 4>}, {pipeline_mode = #tpu.pipeline_mode<synchronous>, transform_indices = @transform_4, window_bounds = array<i64: 1, 4>}, {transform_indices = @transform_5, window_bounds = array<i64: 1, 4, 24, 4>}]} {
    %c0 = arith.constant 0 : index
    %c0_0 = arith.constant 0 : index
    %c0_1 = arith.constant 0 : index
    %c0_2 = arith.constant 0 : index
    %0 = vector.load %arg2[%c0, %c0_0, %c0_1, %c0_2] : memref<1x4x24x4xf32, #tpu.memory_space<vmem>>, vector<1x4x24x4xf32>
    %1 = vector.shape_cast %0 : vector<1x4x24x4xf32> to vector<4x24x4xf32>
    %2 = vector.shape_cast %1 : vector<4x24x4xf32> to vector<96x4xf32>
    %c1_i32 = arith.constant 1 : i32
    %3 = tpu.dynamic_rotate %2 by %c1_i32 dim 0 : vector<96x4xf32>, i32 -> vector<96x4xf32>
    %c95_i32 = arith.constant 95 : i32
    %4 = tpu.dynamic_rotate %2 by %c95_i32 dim 0 : vector<96x4xf32>, i32 -> vector<96x4xf32>
    %5 = tpu.concatenate %3, %2, %4 in 1 : vector<96x4xf32>, vector<96x4xf32>, vector<96x4xf32> -> vector<96x12xf32>
    %c1 = arith.constant 1 : index
    %c0_3 = arith.constant 0 : index
    %c0_4 = arith.constant 0 : index
    %6 = vector.load %arg5[%c1, %c0_3, %c0_4] : memref<3x12x4xf32, #tpu.memory_space<vmem>>, vector<1x12x4xf32>
    %7 = vector.shape_cast %6 : vector<1x12x4xf32> to vector<12x4xf32>
    %cst = arith.constant dense<0.000000e+00> : vector<96x4xf32>
    %8 = tpu.matmul %5, %7, %cst {dimension_numbers = #tpu.dot_dimension_numbers<[1], [0], [0], [1], [0, 0, 1, 1], [], []>} : vector<96x12xf32>, vector<12x4xf32>, vector<96x4xf32> -> vector<96x4xf32>
    %c0_5 = arith.constant 0 : index
    %c0_6 = arith.constant 0 : index
    %9 = vector.load %arg8[%c0_5, %c0_6] : memref<96x4xf32, #tpu.memory_space<vmem>>, vector<96x4xf32>
    tpu.vector_store %arg8[%c0_5, %c0_6], %8 {strides = array<i32>} : memref<96x4xf32, #tpu.memory_space<vmem>>, vector<96x4xf32>,
    %c24 = arith.constant 24 : index
    %c0_7 = arith.constant 0 : index
    %10 = vector.load %arg8[%c24, %c0_7] : memref<96x4xf32, #tpu.memory_space<vmem>>, vector<72x4xf32>
    %11 = vector.extract_strided_slice %5 {offsets = [0, 0], sizes = [72, 12], strides = [1, 1]} : vector<96x12xf32> to vector<72x12xf32>
    %c0_8 = arith.constant 0 : index
    %c0_9 = arith.constant 0 : index
    %c0_10 = arith.constant 0 : index
    %12 = vector.load %arg5[%c0_8, %c0_9, %c0_10] : memref<3x12x4xf32, #tpu.memory_space<vmem>>, vector<1x12x4xf32>
    %13 = vector.shape_cast %12 : vector<1x12x4xf32> to vector<12x4xf32>
    %cst_11 = arith.constant dense<0.000000e+00> : vector<72x4xf32>
    %14 = tpu.matmul %11, %13, %cst_11 {dimension_numbers = #tpu.dot_dimension_numbers<[1], [0], [0], [1], [0, 0, 1, 1], [], []>} : vector<72x12xf32>, vector<12x4xf32>, vector<72x4xf32> -> vector<72x4xf32>
    %15 = arith.addf %10, %14 : vector<72x4xf32>
    %c24_12 = arith.constant 24 : index
    %c0_13 = arith.constant 0 : index
    %16 = vector.load %arg8[%c24_12, %c0_13] : memref<96x4xf32, #tpu.memory_space<vmem>>, vector<72x4xf32>
    tpu.vector_store %arg8[%c24_12, %c0_13], %15 {strides = array<i32>} : memref<96x4xf32, #tpu.memory_space<vmem>>, vector<72x4xf32>,
    %c0_14 = arith.constant 0 : index
    %c0_15 = arith.constant 0 : index
    %17 = vector.load %arg8[%c0_14, %c0_15] : memref<96x4xf32, #tpu.memory_space<vmem>>, vector<72x4xf32>
    %18 = vector.extract_strided_slice %5 {offsets = [24, 0], sizes = [72, 12], strides = [1, 1]} : vector<96x12xf32> to vector<72x12xf32>
    %c2 = arith.constant 2 : index
    %c0_16 = arith.constant 0 : index
    %c0_17 = arith.constant 0 : index
    %19 = vector.load %arg5[%c2, %c0_16, %c0_17] : memref<3x12x4xf32, #tpu.memory_space<vmem>>, vector<1x12x4xf32>
    %20 = vector.shape_cast %19 : vector<1x12x4xf32> to vector<12x4xf32>
    %cst_18 = arith.constant dense<0.000000e+00> : vector<72x4xf32>
    %21 = tpu.matmul %18, %20, %cst_18 {dimension_numbers = #tpu.dot_dimension_numbers<[1], [0], [0], [1], [0, 0, 1, 1], [], []>} : vector<72x12xf32>, vector<12x4xf32>, vector<72x4xf32> -> vector<72x4xf32>
    %22 = arith.addf %17, %21 : vector<72x4xf32>
    %c0_19 = arith.constant 0 : index
    %c0_20 = arith.constant 0 : index
    %23 = vector.load %arg8[%c0_19, %c0_20] : memref<96x4xf32, #tpu.memory_space<vmem>>, vector<72x4xf32>
    tpu.vector_store %arg8[%c0_19, %c0_20], %22 {strides = array<i32>} : memref<96x4xf32, #tpu.memory_space<vmem>>, vector<72x4xf32>,
    %c0_i32 = arith.constant 0 : i32
    %24 = arith.cmpi sgt, %arg1, %c0_i32 : i32
    %25 = arith.extui %24 : i1 to i32
    %c0_i32_21 = arith.constant 0 : i32
    %26 = arith.cmpi ne, %25, %c0_i32_21 : i32
    scf.if %26 {
      %c0_32 = arith.constant 0 : index
      %c0_33 = arith.constant 0 : index
      %c0_34 = arith.constant 0 : index
      %c0_35 = arith.constant 0 : index
      %40 = vector.load %arg3[%c0_32, %c0_33, %c0_34, %c0_35] : memref<1x1x24x4xf32, #tpu.memory_space<vmem>>, vector<1x1x24x4xf32>
      %41 = vector.shape_cast %40 : vector<1x1x24x4xf32> to vector<24x4xf32>
      %c1_i32_36 = arith.constant 1 : i32
      %42 = tpu.dynamic_rotate %41 by %c1_i32_36 dim 0 : vector<24x4xf32>, i32 -> vector<24x4xf32>
      %c23_i32 = arith.constant 23 : i32
      %43 = tpu.dynamic_rotate %41 by %c23_i32 dim 0 : vector<24x4xf32>, i32 -> vector<24x4xf32>
      %44 = tpu.concatenate %42, %41, %43 in 1 : vector<24x4xf32>, vector<24x4xf32>, vector<24x4xf32> -> vector<24x12xf32>
      %c0_37 = arith.constant 0 : index
      %c0_38 = arith.constant 0 : index
      %45 = vector.load %arg8[%c0_37, %c0_38] : memref<96x4xf32, #tpu.memory_space<vmem>>, vector<24x4xf32>
      %c0_39 = arith.constant 0 : index
      %c0_40 = arith.constant 0 : index
      %c0_41 = arith.constant 0 : index
      %46 = vector.load %arg5[%c0_39, %c0_40, %c0_41] : memref<3x12x4xf32, #tpu.memory_space<vmem>>, vector<1x12x4xf32>
      %47 = vector.shape_cast %46 : vector<1x12x4xf32> to vector<12x4xf32>
      %cst_42 = arith.constant dense<0.000000e+00> : vector<24x4xf32>
      %48 = tpu.matmul %44, %47, %cst_42 {dimension_numbers = #tpu.dot_dimension_numbers<[1], [0], [0], [1], [0, 0, 1, 1], [], []>} : vector<24x12xf32>, vector<12x4xf32>, vector<24x4xf32> -> vector<24x4xf32>
      %49 = arith.addf %45, %48 : vector<24x4xf32>
      %c0_43 = arith.constant 0 : index
      %c0_44 = arith.constant 0 : index
      %50 = vector.load %arg8[%c0_43, %c0_44] : memref<96x4xf32, #tpu.memory_space<vmem>>, vector<24x4xf32>
      tpu.vector_store %arg8[%c0_43, %c0_44], %49 {strides = array<i32>} : memref<96x4xf32, #tpu.memory_space<vmem>>, vector<24x4xf32>,
    } else {
    }
    %c3_i32 = arith.constant 3 : i32
    %27 = arith.cmpi slt, %arg1, %c3_i32 : i32
    %28 = arith.extui %27 : i1 to i32
    %c0_i32_22 = arith.constant 0 : i32
    %29 = arith.cmpi ne, %28, %c0_i32_22 : i32
    scf.if %29 {
      %c0_32 = arith.constant 0 : index
      %c0_33 = arith.constant 0 : index
      %c0_34 = arith.constant 0 : index
      %c0_35 = arith.constant 0 : index
      %40 = vector.load %arg4[%c0_32, %c0_33, %c0_34, %c0_35] : memref<1x1x24x4xf32, #tpu.memory_space<vmem>>, vector<1x1x24x4xf32>
      %41 = vector.shape_cast %40 : vector<1x1x24x4xf32> to vector<24x4xf32>
      %c1_i32_36 = arith.constant 1 : i32
      %42 = tpu.dynamic_rotate %41 by %c1_i32_36 dim 0 : vector<24x4xf32>, i32 -> vector<24x4xf32>
      %c23_i32 = arith.constant 23 : i32
      %43 = tpu.dynamic_rotate %41 by %c23_i32 dim 0 : vector<24x4xf32>, i32 -> vector<24x4xf32>
      %44 = tpu.concatenate %42, %41, %43 in 1 : vector<24x4xf32>, vector<24x4xf32>, vector<24x4xf32> -> vector<24x12xf32>
      %c72 = arith.constant 72 : index
      %c0_37 = arith.constant 0 : index
      %45 = vector.load %arg8[%c72, %c0_37] : memref<96x4xf32, #tpu.memory_space<vmem>>, vector<24x4xf32>
      %c2_38 = arith.constant 2 : index
      %c0_39 = arith.constant 0 : index
      %c0_40 = arith.constant 0 : index
      %46 = vector.load %arg5[%c2_38, %c0_39, %c0_40] : memref<3x12x4xf32, #tpu.memory_space<vmem>>, vector<1x12x4xf32>
      %47 = vector.shape_cast %46 : vector<1x12x4xf32> to vector<12x4xf32>
      %cst_41 = arith.constant dense<0.000000e+00> : vector<24x4xf32>
      %48 = tpu.matmul %44, %47, %cst_41 {dimension_numbers = #tpu.dot_dimension_numbers<[1], [0], [0], [1], [0, 0, 1, 1], [], []>} : vector<24x12xf32>, vector<12x4xf32>, vector<24x4xf32> -> vector<24x4xf32>
      %49 = arith.addf %45, %48 : vector<24x4xf32>
      %c72_42 = arith.constant 72 : index
      %c0_43 = arith.constant 0 : index
      %50 = vector.load %arg8[%c72_42, %c0_43] : memref<96x4xf32, #tpu.memory_space<vmem>>, vector<24x4xf32>
      tpu.vector_store %arg8[%c72_42, %c0_43], %49 {strides = array<i32>} : memref<96x4xf32, #tpu.memory_space<vmem>>, vector<24x4xf32>,
    } else {
    }
    %c0_23 = arith.constant 0 : index
    %c0_24 = arith.constant 0 : index
    %30 = vector.load %arg8[%c0_23, %c0_24] : memref<96x4xf32, #tpu.memory_space<vmem>>, vector<96x4xf32>
    %c0_25 = arith.constant 0 : index
    %c0_26 = arith.constant 0 : index
    %31 = vector.load %arg6[%c0_25, %c0_26] : memref<1x4xf32, #tpu.memory_space<vmem>>, vector<1x4xf32>
    %32 = vector.broadcast %31 : vector<1x4xf32> to vector<96x4xf32>
    %33 = arith.addf %30, %32 : vector<96x4xf32>
    %cst_27 = arith.constant 0.000000e+00 : f32
    %34 = vector.broadcast %cst_27 : f32 to vector<96x4xf32>
    %35 = arith.maximumf %33, %34 : vector<96x4xf32>
    %36 = vector.shape_cast %35 : vector<96x4xf32> to vector<4x24x4xf32>
    %c0_28 = arith.constant 0 : index
    %c0_29 = arith.constant 0 : index
    %c0_30 = arith.constant 0 : index
    %c0_31 = arith.constant 0 : index
    %37 = vector.load %arg7[%c0_28, %c0_29, %c0_30, %c0_31] : memref<1x4x24x4xf32, #tpu.memory_space<vmem>>, vector<1x4x24x4xf32>
    %38 = vector.shape_cast %37 : vector<1x4x24x4xf32> to vector<4x24x4xf32>
    %39 = vector.shape_cast %36 : vector<4x24x4xf32> to vector<1x4x24x4xf32>
    tpu.vector_store %arg7[%c0_28, %c0_29, %c0_30, %c0_31], %39 {strides = array<i32>} : memref<1x4x24x4xf32, #tpu.memory_space<vmem>>, vector<1x4x24x4xf32>,
    return
  }
  func.func @transform_0(%arg0: i32, %arg1: i32) -> (i32, i32, i32, i32) {
    %c0_i32 = arith.constant 0 : i32
    %c0_i32_0 = arith.constant 0 : i32
    %c0_i32_1 = arith.constant 0 : i32
    return %arg0, %arg1, %c0_i32, %c0_i32_0 : i32, i32, i32, i32
  }
  func.func @transform_1(%arg0: i32, %arg1: i32) -> (i32, i32, i32, i32) {
    %c4_i32 = arith.constant 4 : i32
    %0 = arith.muli %arg1, %c4_i32 : i32
    %c1_i32 = arith.constant 1 : i32
    %1 = arith.subi %0, %c1_i32 : i32
    %c0_i32 = arith.constant 0 : i32
    %2 = arith.maxsi %1, %c0_i32 : i32
    %c0_i32_0 = arith.constant 0 : i32
    %c0_i32_1 = arith.constant 0 : i32
    %c0_i32_2 = arith.constant 0 : i32
    return %arg0, %2, %c0_i32_0, %c0_i32_1 : i32, i32, i32, i32
  }
  func.func @transform_2(%arg0: i32, %arg1: i32) -> (i32, i32, i32, i32) {
    %c4_i32 = arith.constant 4 : i32
    %0 = arith.muli %arg1, %c4_i32 : i32
    %c4_i32_0 = arith.constant 4 : i32
    %1 = arith.addi %0, %c4_i32_0 : i32
    %c15_i32 = arith.constant 15 : i32
    %2 = arith.minsi %1, %c15_i32 : i32
    %c0_i32 = arith.constant 0 : i32
    %c0_i32_1 = arith.constant 0 : i32
    %c0_i32_2 = arith.constant 0 : i32
    return %arg0, %2, %c0_i32, %c0_i32_1 : i32, i32, i32, i32
  }
  func.func @transform_3(%arg0: i32, %arg1: i32) -> (i32, i32, i32) {
    %c0_i32 = arith.constant 0 : i32
    %c0_i32_0 = arith.constant 0 : i32
    %c0_i32_1 = arith.constant 0 : i32
    %c0_i32_2 = arith.constant 0 : i32
    return %c0_i32, %c0_i32_0, %c0_i32_1 : i32, i32, i32
  }
  func.func @transform_4(%arg0: i32, %arg1: i32) -> (i32, i32) {
    %c0_i32 = arith.constant 0 : i32
    %c0_i32_0 = arith.constant 0 : i32
    %c0_i32_1 = arith.constant 0 : i32
    return %c0_i32, %c0_i32_0 : i32, i32
  }
  func.func @transform_5(%arg0: i32, %arg1: i32) -> (i32, i32, i32, i32) {
    %c0_i32 = arith.constant 0 : i32
    %c0_i32_0 = arith.constant 0 : i32
    %c0_i32_1 = arith.constant 0 : i32
    return %arg0, %arg1, %c0_i32, %c0_i32_0 : i32, i32, i32, i32
  }
}

</mosaic_0001>

<bundles_post_ra>
// kernel: _rpn_conv_single.1
= control target key start
LH: loop header
LB: loop body
LE: loop exit
PB: predicated region body
PF: predicated region fallthrough
CT: control target
= control target key end

     0   :  { %s1957_s18 = smov 0   ;;  %s1959_s19 = smov 0   ;;  %s2449_s0 = inlined_call_operand.vmem [shape: f32[2,16,24,4], index: 0, kind: input, shape index: {}, may-alias: {0,1,2}]   ;;  %s2450_s1 = inlined_call_operand.vmem [shape: f32[2,16,24,4], index: 1, kind: input, shape index: {}, may-alias: {0,1,2}]   ;;  %s2451_s2 = inlined_call_operand.vmem [shape: f32[2,16,24,4], index: 2, kind: input, shape index: {}, may-alias: {0,1,2}]   ;;  %s2452_s3 = inlined_call_operand.vmem [shape: f32[3,12,4], index: 3, kind: input, shape index: {}]   ;;  %s2453_s4 = inlined_call_operand.vmem [shape: f32[1,4], index: 4, kind: input, shape index: {}]   ;;  %s2454_s5 = inlined_call_operand.vmem [shape: f32[2,16,24,4], index: 5, kind: output, shape index: {}]  }
   0x1   :  { %s1961_s20 = smov 0   ;;  %s1963_s21 = smov 0  }
   0x2   :  { %s1965_s22 = smov 0  }
   0x3 LB: > { %s24_s23 = sadd.s32 1, %s1901_s20  ;;  %s27_s24 = sadd.s32 1, %s1905_s21  ;;  %s1909_s22 = sphi %s1965_s22, %s15_s22   ;;  %s1905_s21 = sphi %s1963_s21, %s2461_s21   ;;  %s1901_s20 = sphi %s1961_s20, %s2460_s20   ;;  %s1897_s19 = sphi %s1959_s19, %s2459_s19   ;;  %s1893_s18 = sphi %s1957_s18, %s2458_s18  }
   0x4   : > { %p25_p0 = scmp.ge.s32.totalorder %s24_s23, 4  ;;  %p1555_p1 = scmp.ge.s32.totalorder %s1909_s22, 1 }
   0x5   : > { %p273_p2 = scmp.lt.s32.totalorder %s1909_s22, 9 }
   0x6   : > { %s2463_s23 = smov (%p25_p0, %s24_s23), 0  ;;  %s2465_s24 = smov (!%p25_p0, %s27_s24), %s1905_s21 }
   0x7   : > { %p274_p3 = pnand %p1555_p1, %p273_p2  ;;  %p29_p4 = scmp.ge.s32.totalorder %s2465_s24, 2 }
   0x8   : > { %s1990_s25 = sshll.u32 (!%p274_p3), %s1893_s18, 2  ;;  %p338_p5 = scmp.lt.s32.totalorder (!%p274_p3), %s1897_s19, 1  ;;  %v417_v0 = vlaneseq (!%p274_p3)  ;;  %v1573_v1 = vld [vmem:[%s2452_s3 + $0x10] sm:$0xff] (!%p274_p3)  ;;  %v1574_v2 = vld [vmem:[%s2452_s3 + $0x18] sm:$0xf] (!%p274_p3)  ;;  %vm619_vm0 = vcmask (!%p274_p3), 1043456  }
   0x9   : > { %s2467_s24 = smov (%p29_p4, %s2465_s24), 0  ;;  %277 = sbr.rel (%p274_p3) target bundleno = 1100 (0x44c), region = 40 }
   0xa   : > { %p340_p6 = scmp.lt.s32.totalorder (!%p274_p3), %s1990_s25, 15  ;;  %s1559_s26 = sadd.s32 (!%p274_p3), 4294967295, %s1990_s25  ;;  %v1783_v3 = vpack.c.bf16 (!%p274_p3), %v1574_v2, %v1573_v1  ;;  %v2009_v4 = vshrl.u32 (!%p274_p3), %v417_v0, 7  ;;  %vm1911_vm1 = vmmov (!%p274_p3), 1   ;;  %v1914_v60 = vmov (!%p274_p3), 0.0|0.0  }
   0xb   : > { %p350_p7 = scmp.gt.s32.totalorder (!%p274_p3), %s1559_s26, 0  ;;  %p1560_p8 = scmp.lt.s32.totalorder (!%p274_p3), %s1559_s26, 15  ;;  %vm2011_vm2 = vmpackc.low (!%p274_p3), %vm619_vm0, %vm1911_vm1  ;;  %vm553_vm5 = vcmask (!%p274_p3), 31744   ;;  %vm566_vm6 = vcmask (!%p274_p3), 64512   ;;  %vm582_vm7 = vcmask (!%p274_p3), 97280   ;;  %vm1915_vm8 = vmmov (!%p274_p3), 0  }
   0xc   : > { %s366_s11 = sadd.s32 (!%p274_p3), 4, %s1990_s25  ;;  %1785 = vmatprep.subr.msk.bf16.mxu0 (!%p274_p3), %vm2011_vm2, %v1783_v3  ;;  %1805 = vmatprep.subr.msk.bf16.mxu1 (!%p274_p3), %vm2011_vm2, %v1783_v3  ;;  %vm419_vm3 = vcmp.lt.s32.totalorder (!%p274_p3), %v2009_v4, 1  ;;  %vm444_vm4 = vcmp.lt.s32.totalorder (!%p274_p3), %v2009_v4, 7  ;;  %s1913_s14 = smov (!%p274_p3), 8  }
   0xd   : > { %p2005_p9 = scmp.lt.s32.totalorder (!%p274_p3), %s366_s11, 15  ;;  %1788 = vmatpush3.bf16.msk.msra.mxu0 (!%p274_p3), %vm2011_vm2, %v1783_v3  ;;  %1806 = vmatpush3.bf16.msk.msra.mxu1 (!%p274_p3), %vm2011_vm2, %v1783_v3  ;;  %p1610_p10 = scmp.le.s32.totalorder (!%p274_p3), %s1893_s18, 0 }
   0xe   : > { %1789 = vmatprep.subr.bf16.mxu1 (!%p274_p3), %v1914_v60  ;;  %1793 = vmatprep.subr.bf16.mxu0 (!%p274_p3), %v1914_v60 }
  0x10   : > { %s2469_s19 = smov (!%p338_p5, %s1897_s19), 1  ;;  %s2473_s11 = smov (!%p2005_p9, %s366_s11), 15 }
  0x11   : > { %s341_s27 = scalar_select %p340_p6, %s1990_s25, 15 }
  0x12   : > { %s1995_s28 = smul.u32 48, %s2469_s19  ;;  %s2475_s11 = smov (!%p2005_p9, %s2473_s11), 15  ;;  %vm1919_vm9 = vmmov (!%p1610_p10), 0  }
  0x13   : > { %s1811_s29 = smul.u32 3, %s341_s27  ;;  %s1912_s27 = smov 4  }
  0x14   : > { %s351_s30 = scalar_select %p350_p7, %s1559_s26, 0 }
  0x15   : > { %s344_s10 = sadd.s32 %s1995_s28, %s1811_s29  ;;  %s1814_s6 = smul.u32 3, %s2475_s11 }
  0x16   : > { %s1557_s12 = sshll.u32 %s344_s10, 3  ;;  %s2471_s30 = smov (!%p1560_p8, %s351_s30), 15 }
  0x17   : > { %s2018_s16 = scalar_lea.vmem %s2449_s0, %s1557_s12  ;;  %s2023_s25 = scalar_lea.vmem %s2454_s5, %s1557_s12 }
  0x18   : > { %v394_v6 = vld [vmem:[%s2018_s16 + $0x8] sm:$0xff]  ;;  %v2032_v7 = vld [vmem:[%s2018_s16] sm:$0xff]  ;;  %v400_v8 = vld [vmem:[%s2018_s16 + $0x38] sm:$0xff]  ;;  %s1813_s26 = smul.u32 3, %s2471_s30  ;;  %s375_s10 = sadd.s32 %s1814_s6, %s1995_s28 }
  0x19   : > { %v406_v9 = vrot.slane %v394_v6, 7  ;;  %v405_v10 = vrot.slane %v2032_v7, 7  ;;  %v2044_v11 = vld [vmem:[%s2018_s16 + $0x30] sm:$0xff]  ;;  %v433_v12 = vrot.slane %v394_v6, 1  ;;  %v412_v13 = vrot.slane %v400_v8, 7  ;;  %471 = vrot.lane.b32.xlu1 %v394_v6, %s1912_s27  ;;  %469 = vrot.lane.b32.xlu0 %v2032_v7, %s1912_s27  ;;  %v401_v20 = vld [vmem:[%s2018_s16 + $0x40] sm:$0xff] }
  0x1a   : > { %v411_v14 = vrot.slane %v2044_v11, 7  ;;  %v432_v15 = vrot.slane %v2032_v7, 1  ;;  %v439_v16 = vrot.slane %v400_v8, 1  ;;  %v438_v17 = vrot.slane %v2044_v11, 1  ;;  %s358_s29 = sadd.s32 %s1813_s26, %s1995_s28  ;;  %v395_v21 = vld [vmem:[%s2018_s16 + $0x10] sm:$0xff]  ;;  %v402_v22 = vld [vmem:[%s2018_s16 + $0x48] sm:$0xff] }
  0x1b   : > { %v2056_v18 = vsel %vm419_vm3, %v405_v10, %v406_v9  ;;  %s1565_s30 = sshll.u32 %s358_s29, 3  ;;  %v2073_v23 = vld [vmem:[%s2018_s16 + $0x58] sm:$0xff]  ;;  %v413_v24 = vrot.slane %v401_v20, 7  ;;  %v414_v27 = vrot.slane %v402_v22, 7  ;;  %v398_v30 = vld [vmem:[%s2018_s16 + $0x28] sm:$0xff]  ;;  %s1570_s28 = sshll.u32 %s375_s10, 3 }
  0x1c   : > { %v2062_v19 = vsel %vm419_vm3, %v411_v14, %v412_v13  ;;  %s2069_s9 = scalar_lea.vmem %s2450_s1, %s1565_s30  ;;  %v449_v25 = vsel %vm444_vm4, %v438_v17, %v439_v16  ;;  %v455_v26 = vsel %vm444_vm4, %v432_v15, %v433_v12  ;;  %v396_v28 = vld [vmem:[%s2018_s16 + $0x18] sm:$0xff]  ;;  %v416_v29 = vrot.slane %v2073_v23, 7  ;;  %s2093_s13 = scalar_lea.vmem %s2451_s2, %s1570_s28  ;;  %v403_v44 = vld [vmem:[%s2018_s16 + $0x50] sm:$0xff]  ;;  %v397_v45 = vld [vmem:[%s2018_s16 + $0x20] sm:$0xff] }
  0x1d   : > { %483 = vrot.lane.b32.xlu1 %v400_v8, %s1912_s27  ;;  %481 = vrot.lane.b32.xlu0 %v2044_v11, %s1912_s27  ;;  %v440_v31 = vrot.slane %v401_v20, 1  ;;  %v434_v32 = vrot.slane %v395_v21, 1  ;;  %v408_v33 = vrot.slane %v396_v28, 7  ;;  %v410_v34 = vrot.slane %v398_v30, 7  ;;  %v769_v7 = vld [vmem:[%s2452_s3] sm:$0xff]  ;;  %s1917_s6 = smov (!%p1610_p10), 4  }
  0x1e   : > { %v2097_v35 = vsel %vm419_vm3, %v416_v29, %v405_v10  ;;  %v2101_v36 = vsel %vm419_vm3, %v412_v13, %v413_v24  ;;  %v407_v37 = vrot.slane %v395_v21, 7  ;;  %v2113_v40 = vsel %vm419_vm3, %v413_v24, %v414_v27 }
  0x1f   : > { %v425_v38 = vsel %vm419_vm3, %v410_v34, %v411_v14  ;;  %v448_v41 = vsel %vm444_vm4, %v439_v16, %v440_v31  ;;  %v454_v42 = vsel %vm444_vm4, %v433_v12, %v434_v32  ;;  %v415_v46 = vrot.slane %v403_v44, 7  ;;  %v770_v14 = vld [vmem:[%s2452_s3 + $0x8] sm:$0xf] }
  0x20   : > { %v2109_v39 = vsel %vm419_vm3, %v406_v9, %v407_v37  ;;  %v2121_v43 = vsel %vm419_vm3, %v407_v37, %v408_v33  ;;  %v409_v47 = vrot.slane %v397_v45, 7  ;;  %v441_v48 = vrot.slane %v402_v22, 1  ;;  %v1599_v16 = vld [vmem:[%s2452_s3 + $0x28] sm:$0xf] }
  0x21   : > { %529 = vrot.lane.b32.xlu1 %v449_v25, %s1913_s14  ;;  %517 = vrot.lane.b32.xlu0 %v455_v26, %s1913_s14  ;;  %v435_v49 = vrot.slane %v396_v28, 1  ;;  %v2131_v50 = vsel %vm419_vm3, %v414_v27, %v415_v46  ;;  %v2139_v52 = vsel %vm419_vm3, %v415_v46, %v416_v29  ;;  %v442_v55 = vrot.slane %v403_v44, 1 }
  0x22   : > { %v2135_v51 = vsel %vm419_vm3, %v408_v33, %v409_v47  ;;  %v447_v53 = vsel %vm444_vm4, %v440_v31, %v441_v48  ;;  %v436_v56 = vrot.slane %v397_v45, 1  ;;  %v2149_v57 = vsel %vm419_vm3, %v409_v47, %v410_v34 }
  0x23   : > { %v453_v54 = vsel %vm444_vm4, %v434_v32, %v435_v49  ;;  %v446_v58 = vsel %vm444_vm4, %v441_v48, %v442_v55  ;;  %v443_v61 = vrot.slane %v2073_v23, 1  ;;  %v437_v62 = vrot.slane %v398_v30, 1 }
  0x24   : > { %v452_v59 = vsel %vm444_vm4, %v435_v49, %v436_v56 }
  0x25   : > { %531 = vrot.lane.b32.xlu1 %v448_v41, %s1913_s14  ;;  %519 = vrot.lane.b32.xlu0 %v454_v42, %s1913_s14  ;;  %v445_v63 = vsel %vm444_vm4, %v442_v55, %v443_v61  ;;  %v451_v0 = vsel %vm444_vm4, %v436_v56, %v437_v62  ;;  %v456_v1 = vsel %vm444_vm4, %v443_v61, %v432_v15  ;;  %v1598_v15 = vld [vmem:[%s2452_s3 + $0x20] sm:$0xff]  ;;  %v1916_v61 = vmov 0.0  }
  0x26   : > { %v450_v2 = vsel %vm444_vm4, %v437_v62, %v438_v17 }
  0x29   : > { %485 = vrot.lane.b32.xlu1 %v401_v20, %s1912_s27  ;;  %473 = vrot.lane.b32.xlu0 %v395_v21, %s1912_s27  ;;  %v1790_v21 = vpack.c.bf16 %v770_v14, %v769_v7 }
  0x2d   : > { %487 = vrot.lane.b32.xlu1 %v402_v22, %s1912_s27  ;;  %475 = vrot.lane.b32.xlu0 %v396_v28, %s1912_s27  ;;  %v1794_v22 = vpack.c.bf16 %v1599_v16, %v1598_v15 }
  0x31   : > { %533 = vrot.lane.b32.xlu1 %v447_v53, %s1913_s14  ;;  %521 = vrot.lane.b32.xlu0 %v453_v54, %s1913_s14 }
  0x35   : > { %535 = vrot.lane.b32.xlu1 %v446_v58, %s1913_s14  ;;  %523 = vrot.lane.b32.xlu0 %v452_v59, %s1913_s14 }
  0x39   : > { %489 = vrot.lane.b32.xlu1 %v403_v44, %s1912_s27  ;;  %477 = vrot.lane.b32.xlu0 %v397_v45, %s1912_s27 }
  0x3d   : > { %491 = vrot.lane.b32.xlu1 %v2073_v23, %s1912_s27  ;;  %479 = vrot.lane.b32.xlu0 %v398_v30, %s1912_s27 }
  0x41   : > { %537 = vrot.lane.b32.xlu1 %v445_v63, %s1913_s14  ;;  %525 = vrot.lane.b32.xlu0 %v451_v0, %s1913_s14 }
  0x45   : > { %539 = vrot.lane.b32.xlu1 %v456_v1, %s1913_s14  ;;  %527 = vrot.lane.b32.xlu0 %v450_v2, %s1913_s14 }
  0x8b   : > { %v472_v3 = vpop.permute.xlu1 %471  ;;  %v470_v6 = vpop.permute.xlu0 %469 }
  0x8c   : > { %v554_v10 = vsel %vm553_vm5, %v2097_v35, %v470_v6  ;;  %v555_v23 = vsel %vm553_vm5, %v2056_v18, %v472_v3 }
  0x8f   : > { %v484_v8 = vpop.permute.xlu1 %483  ;;  %v482_v9 = vpop.permute.xlu0 %481 }
  0x90   : > { %v560_v11 = vsel %vm553_vm5, %v425_v38, %v482_v9  ;;  %v561_v24 = vsel %vm553_vm5, %v2062_v19, %v484_v8 }
  0x93   : > { %v530_v12 = vpop.permute.xlu1 %529  ;;  %v518_v13 = vpop.permute.xlu0 %517 }
  0x94   : > { %v567_v17 = vsel %vm566_vm6, %v554_v10, %v518_v13  ;;  %v2198_v20 = vsel %vm566_vm6, %v560_v11, %v530_v12 }
  0x95   : > { %1677 = vmatprep.mubr.msk.f32.mxu0 %vm582_vm7, %v567_v17  ;;  %1686 = vmatprep.mubr.msk.f32.mxu1 %vm582_vm7, %v2198_v20 }
  0x97   : > { %v532_v25 = vpop.permute.xlu1 %531  ;;  %v520_v26 = vpop.permute.xlu0 %519 }
  0x98   : > { %v2208_v27 = vsel %vm566_vm6, %v561_v24, %v532_v25  ;;  %v568_v28 = vsel %vm566_vm6, %v555_v23, %v520_v26 }
  0x99   : > { %1678 = vmatmul.mubr.msk.f32.vlgmr.msra.gmra.mrb[0].mxu0 %vm582_vm7, %v568_v28  ;;  %1687 = vmatmul.mubr.msk.f32.vlgmr.msra.gmra.mrb[0].mxu1 %vm582_vm7, %v2208_v27 }
  0x9a   : > { %1792 = vmatpush3.bf16.msk.msra.mxu1 %vm2011_vm2, %v1790_v21  ;;  %1796 = vmatpush3.bf16.msk.msra.mxu0 %vm2011_vm2, %v1794_v22 }
  0x9b   : > { %v486_v18 = vpop.permute.xlu1 %485  ;;  %v474_v19 = vpop.permute.xlu0 %473 }
  0x9c   : > { %v562_v31 = vsel %vm553_vm5, %v2101_v36, %v486_v18  ;;  %v556_v32 = vsel %vm553_vm5, %v2109_v39, %v474_v19 }
  0x9f   : > { %v488_v29 = vpop.permute.xlu1 %487  ;;  %v476_v30 = vpop.permute.xlu0 %475 }
  0xa0   : > { %v563_v38 = vsel %vm553_vm5, %v2113_v40, %v488_v29  ;;  %v557_v36 = vsel %vm553_vm5, %v2121_v43, %v476_v30 }
  0xa3   : > { %v534_v33 = vpop.permute.xlu1 %533  ;;  %v522_v34 = vpop.permute.xlu0 %521 }
  0xa4   : > { %v2223_v35 = vsel %vm566_vm6, %v562_v31, %v534_v33  ;;  %v569_v37 = vsel %vm566_vm6, %v556_v32, %v522_v34 }
  0xa5   : > { %1680 = vmatprep.mubr.msk.f32.mxu0 %vm582_vm7, %v569_v37  ;;  %1689 = vmatprep.mubr.msk.f32.mxu1 %vm582_vm7, %v2223_v35 }
  0xa7   : > { %v536_v41 = vpop.permute.xlu1 %535  ;;  %v524_v39 = vpop.permute.xlu0 %523 }
  0xa8   : > { %v576_v42 = vsel %vm566_vm6, %v563_v38, %v536_v41  ;;  %v570_v44 = vsel %vm566_vm6, %v557_v36, %v524_v39 }
  0xa9   : > { %1681 = vmatmul.mubr.msk.f32.gmra.mrb[2].mxu0 %vm582_vm7, %v570_v44  ;;  %1690 = vmatmul.mubr.msk.f32.gmra.mrb[2].mxu1 %vm582_vm7, %v576_v42 }
  0xab   : > { %v490_v45 = vpop.permute.xlu1 %489  ;;  %v478_v46 = vpop.permute.xlu0 %477 }
  0xac   : > { %v564_v40 = vsel %vm553_vm5, %v2131_v50, %v490_v45  ;;  %v558_v43 = vsel %vm553_vm5, %v2135_v51, %v478_v46 }
  0xaf   : > { %v492_v47 = vpop.permute.xlu1 %491  ;;  %v480_v48 = vpop.permute.xlu0 %479 }
  0xb0   : > { %v565_v56 = vsel %vm553_vm5, %v2139_v52, %v492_v47  ;;  %v559_v58 = vsel %vm553_vm5, %v2149_v57, %v480_v48 }
  0xb3   : > { %v538_v49 = vpop.permute.xlu1 %537  ;;  %v526_v53 = vpop.permute.xlu0 %525 }
  0xb4   : > { %v577_v54 = vsel %vm566_vm6, %v564_v40, %v538_v49  ;;  %v571_v55 = vsel %vm566_vm6, %v558_v43, %v526_v53 }
  0xb5   : > { %1683 = vmatprep.mubr.msk.f32.mxu0 %vm582_vm7, %v571_v55  ;;  %1692 = vmatprep.mubr.msk.f32.mxu1 %vm582_vm7, %v577_v54 }
  0xb7   : > { %v540_v50 = vpop.permute.xlu1 %539  ;;  %v528_v59 = vpop.permute.xlu0 %527 }
  0xb8   : > { %v578_v51 = vsel %vm566_vm6, %v565_v56, %v540_v50  ;;  %v572_v60 = vsel %vm566_vm6, %v559_v58, %v528_v59 }
  0xb9   : > { %1684 = vmatmul.mubr.msk.f32.gmra.mrb[4].mxu0 %vm582_vm7, %v572_v60  ;;  %1693 = vmatmul.mubr.msk.f32.gmra.mrb[4].mxu1 %vm582_vm7, %v578_v51 }
  0xba   : > { %1699 = vmatprep.mubr.msk.f32.mxu1 %vm1915_vm8, %v1916_v61  ;;  %1730 = vmatprep.mubr.msk.f32.mxu0 %vm1915_vm8, %v1916_v61 }
  0xbd   : > { %1700 = vmatmul.mubr.msk.f32.vlgmr.msra.gmra.mrb[6].mxu1 %vm582_vm7, %v567_v17  ;;  %1731 = vmatmul.mubr.msk.f32.vlgmr.msra.gmra.mrb[6].mxu0 %vm582_vm7, %v570_v44 }
  0xbe   : > { %1702 = vmatprep.mubr.msk.f32.mxu1 %vm1915_vm8, %v1916_v61  ;;  %1733 = vmatprep.mubr.msk.f32.mxu0 %vm1915_vm8, %v1916_v61 }
  0xc1   : > { %1703 = vmatmul.mubr.msk.f32.gmra.mrb[8].mxu1 %vm582_vm7, %v568_v28  ;;  %1734 = vmatmul.mubr.msk.f32.gmra.mrb[8].mxu0 %vm582_vm7, %v571_v55 }
  0xc2   : > { %1705 = vmatprep.mubr.msk.f32.mxu1 %vm1915_vm8, %v1916_v61  ;;  %1736 = vmatprep.mubr.msk.f32.mxu0 %vm1915_vm8, %v1916_v61 }
  0xc5   : > { %1706 = vmatmul.mubr.msk.f32.gmra.mrb[10].mxu1 %vm582_vm7, %v569_v37  ;;  %1737 = vmatmul.mubr.msk.f32.gmra.mrb[10].mxu0 %vm582_vm7, %v572_v60 }
  0xc6   : > { %1708 = vmatprep.mubr.msk.f32.mxu1 %vm1915_vm8, %v1916_v61  ;;  %1739 = vmatprep.mubr.msk.f32.mxu0 %vm1915_vm8, %v1916_v61 }
  0xc9   : > { %1709 = vmatmul.mubr.msk.f32.gmra.mrb[12].mxu1 %vm582_vm7, %v570_v44  ;;  %1740 = vmatmul.mubr.msk.f32.gmra.mrb[12].mxu0 %vm582_vm7, %v2198_v20 }
  0xca   : > { %1711 = vmatprep.mubr.msk.f32.mxu1 %vm1915_vm8, %v1916_v61  ;;  %1742 = vmatprep.mubr.msk.f32.mxu0 %vm1915_vm8, %v1916_v61 }
  0xcd   : > { %1712 = vmatmul.mubr.msk.f32.gmra.mrb[14].mxu1 %vm582_vm7, %v571_v55  ;;  %1743 = vmatmul.mubr.msk.f32.gmra.mrb[14].mxu0 %vm582_vm7, %v2208_v27 }
  0xce   : > { %1714 = vmatprep.mubr.msk.f32.mxu1 %vm1915_vm8, %v1916_v61  ;;  %1745 = vmatprep.mubr.msk.f32.mxu0 %vm1915_vm8, %v1916_v61 }
  0xd1   : > { %1715 = vmatmul.mubr.msk.f32.gmra.mrb[16].mxu1 %vm582_vm7, %v572_v60  ;;  %1746 = vmatmul.mubr.msk.f32.gmra.mrb[16].mxu0 %vm582_vm7, %v2223_v35 }
  0xd2   : > { %1717 = vmatprep.mubr.msk.f32.mxu1 %vm1915_vm8, %v1916_v61  ;;  %1748 = vmatprep.mubr.msk.f32.mxu0 %vm1915_vm8, %v1916_v61 }
  0xd5   : > { %1718 = vmatmul.mubr.msk.f32.gmra.mrb[18].mxu1 %vm582_vm7, %v2198_v20  ;;  %1749 = vmatmul.mubr.msk.f32.gmra.mrb[18].mxu0 %vm582_vm7, %v576_v42 }
  0xd6   : > { %1720 = vmatprep.mubr.msk.f32.mxu1 %vm1915_vm8, %v1916_v61  ;;  %1751 = vmatprep.mubr.msk.f32.mxu0 %vm1915_vm8, %v1916_v61 }
  0xd9   : > { %1721 = vmatmul.mubr.msk.f32.gmra.mrb[20].mxu1 %vm582_vm7, %v2208_v27  ;;  %1752 = vmatmul.mubr.msk.f32.gmra.mrb[20].mxu0 %vm582_vm7, %v577_v54 }
  0xda   : > { %1723 = vmatprep.mubr.msk.f32.mxu1 %vm1915_vm8, %v1916_v61  ;;  %1754 = vmatprep.mubr.msk.f32.mxu0 %vm1915_vm8, %v1916_v61 }
  0xdd   : > { %1724 = vmatmul.mubr.msk.f32.gmra.mrb[22].mxu1 %vm582_vm7, %v2223_v35  ;;  %1755 = vmatmul.mubr.msk.f32.gmra.mrb[22].mxu0 %vm582_vm7, %v578_v51 }
 0x16c   : > { %v1679_v52 = vpop.f32.mrb[0].mxu0  ;;  %v1688_v57 = vpop.f32.mrb[0].mxu1 }
 0x16d   : > { %749 = vst.msk [vmem:[#allocation2 + $0x8] sm:$0xff] %vm553_vm5, %v1679_v52  ;;  %755 = vst.msk [vmem:[#allocation2 + $0x38] sm:$0xff] %vm553_vm5, %v1688_v57  ;;  %v689_v62 = vpop.f32.mrb[1].mxu0  ;;  %v719_v63 = vpop.f32.mrb[1].mxu1 }
 0x16e   : > { %748 = vst.msk [vmem:[#allocation2] sm:$0xff] %vm553_vm5, %v689_v62  ;;  %754 = vst.msk [vmem:[#allocation2 + $0x30] sm:$0xff] %vm553_vm5, %v719_v63 }
 0x174   : > { %v903_v21 = vld [vmem:[#allocation2 + $0x8] sm:$0xff]  ;;  %v764_v45 = vld [vmem:[#allocation2 + $0x38] sm:$0xff] }
 0x175   : > { %v902_v12 = vld [vmem:[#allocation2] sm:$0xff]  ;;  %v763_v34 = vld [vmem:[#allocation2 + $0x30] sm:$0xff] }
 0x17c   : > { %v1682_v0 = vpop.f32.mrb[2].mxu0  ;;  %v1691_v1 = vpop.f32.mrb[2].mxu1 }
 0x17d   : > { %751 = vst.msk [vmem:[#allocation2 + $0x18] sm:$0xff] %vm553_vm5, %v1682_v0  ;;  %757 = vst.msk [vmem:[#allocation2 + $0x48] sm:$0xff] %vm553_vm5, %v1691_v1  ;;  %v699_v2 = vpop.f32.mrb[3].mxu0  ;;  %v729_v3 = vpop.f32.mrb[3].mxu1 }
 0x17e   : > { %750 = vst.msk [vmem:[#allocation2 + $0x10] sm:$0xff] %vm553_vm5, %v699_v2  ;;  %756 = vst.msk [vmem:[#allocation2 + $0x40] sm:$0xff] %vm553_vm5, %v729_v3 }
 0x184   : > { %v760_v10 = vld [vmem:[#allocation2 + $0x18] sm:$0xff]  ;;  %v766_v60 = vld [vmem:[#allocation2 + $0x48] sm:$0xff] }
 0x185   : > { %v904_v19 = vld [vmem:[#allocation2 + $0x10] sm:$0xff]  ;;  %v765_v53 = vld [vmem:[#allocation2 + $0x40] sm:$0xff] }
 0x18c   : > { %v1685_v6 = vpop.f32.mrb[4].mxu0  ;;  %v1694_v8 = vpop.f32.mrb[4].mxu1 }
 0x18d   : > { %753 = vst.msk [vmem:[#allocation2 + $0x28] sm:$0xff] %vm553_vm5, %v1685_v6  ;;  %759 = vst.msk [vmem:[#allocation2 + $0x58] sm:$0xff] %vm553_vm5, %v1694_v8  ;;  %v709_v9 = vpop.f32.mrb[5].mxu0  ;;  %v739_v7 = vpop.f32.mrb[5].mxu1 }
 0x18e   : > { %752 = vst.msk [vmem:[#allocation2 + $0x20] sm:$0xff] %vm553_vm5, %v709_v9  ;;  %758 = vst.msk [vmem:[#allocation2 + $0x50] sm:$0xff] %vm553_vm5, %v739_v7 }
 0x190   : > { %v840_v11 = vpop.f32.mrb[6].mxu1  ;;  %v983_v13 = vpop.f32.mrb[6].mxu0 }
 0x191   : > { %v884_v14 = vadd.f32 %v840_v11, %v760_v10  ;;  %v1027_v15 = vadd.f32 %v983_v13, %v902_v12  ;;  %v1701_v16 = vpop.f32.mrb[7].mxu1  ;;  %v1732_v17 = vpop.f32.mrb[7].mxu0 }
 0x193   : > { %893 = vst.msk [vmem:[#allocation2 + $0x18] sm:$0xff] %vm553_vm5, %v884_v14  ;;  %1036 = vst.msk [vmem:[#allocation2] sm:$0xff] %vm553_vm5, %v1027_v15 }
 0x194   : > { %v845_v20 = vpop.f32.mrb[8].mxu1  ;;  %v988_v22 = vpop.f32.mrb[8].mxu0  ;;  %v762_v28 = vld [vmem:[#allocation2 + $0x28] sm:$0xff]  ;;  %v768_v12 = vld [vmem:[#allocation2 + $0x58] sm:$0xff] }
 0x195   : > { %v761_v23 = vld [vmem:[#allocation2 + $0x20] sm:$0xff]  ;;  %v1028_v24 = vadd.f32 %v988_v22, %v903_v21  ;;  %v1704_v25 = vpop.f32.mrb[9].mxu1  ;;  %v1735_v26 = vpop.f32.mrb[9].mxu0  ;;  %v767_v2 = vld [vmem:[#allocation2 + $0x50] sm:$0xff]  ;;  %v1050_v22 = vld [vmem:[%s2069_s9 + $0x8] sm:$0xff] (!%p1610_p10) }
 0x196   : > { %v885_v27 = vadd.f32 %v845_v20, %v761_v23  ;;  %v1049_v23 = vld [vmem:[%s2069_s9] sm:$0xff] (!%p1610_p10)  ;;  %1069 = vrot.lane.b32.xlu0 (!%p1610_p10), %v1050_v22, %s1917_s6  ;;  %v1059_v25 = vrot.slane (!%p1610_p10), %v1050_v22, 1 }
 0x197   : > { %1037 = vst.msk [vmem:[#allocation2 + $0x8] sm:$0xff] %vm553_vm5, %v1028_v24  ;;  %v1051_v24 = vld [vmem:[%s2069_s9 + $0x10] sm:$0xff] (!%p1610_p10)  ;;  %1067 = vrot.lane.b32.xlu1 (!%p1610_p10), %v1049_v23, %s1917_s6  ;;  %s1921_s9 = smov (!%p1610_p10), 8  }
 0x198   : > { %894 = vst.msk [vmem:[#allocation2 + $0x20] sm:$0xff] %vm553_vm5, %v885_v27  ;;  %v850_v18 = vpop.f32.mrb[10].mxu1  ;;  %v993_v29 = vpop.f32.mrb[10].mxu0  ;;  %v1060_v26 = vrot.slane (!%p1610_p10), %v1051_v24, 1  ;;  %v1058_v27 = vrot.slane (!%p1610_p10), %v1049_v23, 1 }
 0x199   : > { %v886_v30 = vadd.f32 %v850_v18, %v762_v28  ;;  %v1029_v31 = vadd.f32 %v993_v29, %v904_v19  ;;  %v1707_v32 = vpop.f32.mrb[11].mxu1  ;;  %v1738_v33 = vpop.f32.mrb[11].mxu0  ;;  %v1052_v28 = vrot.slane (!%p1610_p10), %v1049_v23, 7  ;;  %v1097_v18 = vld [vmem:[%s2452_s3] sm:$0xff] (!%p1610_p10)  ;;  %v1053_v19 = vrot.slane (!%p1610_p10), %v1050_v22, 7 }
 0x19a   : > { %v905_v37 = vld [vmem:[#allocation2 + $0x18] sm:$0xff]  ;;  %v1054_v29 = vrot.slane (!%p1610_p10), %v1051_v24, 7  ;;  %v1061_v32 = vsel (!%p1610_p10), %vm444_vm4, %v1059_v25, %v1060_v26 }
 0x19b   : > { %895 = vst.msk [vmem:[#allocation2 + $0x28] sm:$0xff] %vm553_vm5, %v886_v30  ;;  %1038 = vst.msk [vmem:[#allocation2 + $0x10] sm:$0xff] %vm553_vm5, %v1029_v31  ;;  %v1918_v30 = vmov (!%p1610_p10), 0.0|0.0   ;;  %v1098_v31 = vld [vmem:[%s2452_s3 + $0x8] sm:$0xf] (!%p1610_p10)  ;;  %1081 = vrot.lane.b32.xlu0 (!%p1610_p10), %v1061_v32, %s1921_s9  ;;  %1071 = vrot.lane.b32.xlu1 (!%p1610_p10), %v1051_v24, %s1917_s6 }
 0x19c   : > { %v855_v35 = vpop.f32.mrb[12].mxu1  ;;  %v998_v38 = vpop.f32.mrb[12].mxu0  ;;  %1807 = vmatprep.subr.bf16.mxu1 (!%p1610_p10), %v1918_v30  ;;  %1797 = vmatprep.subr.bf16.mxu0 (!%p1610_p10), %v1918_v30  ;;  %v1798_v33 = vpack.c.bf16 (!%p1610_p10), %v1098_v31, %v1097_v18 }
 0x19d   : > { %v887_v36 = vadd.f32 %v855_v35, %v763_v34  ;;  %v1030_v41 = vadd.f32 %v998_v38, %v905_v37  ;;  %v1710_v39 = vpop.f32.mrb[13].mxu1  ;;  %v1741_v42 = vpop.f32.mrb[13].mxu0  ;;  %v1920_v34 = vmov (!%p1610_p10), 0.0   ;;  %v1056_v35 = vsel (!%p1610_p10), %vm419_vm3, %v1052_v28, %v1053_v19 }
 0x19e   : > { %1764 = vmatprep.mubr.msk.f32.mxu1 (!%p1610_p10), %vm1919_vm9, %v1920_v34  ;;  %v1057_v37 = vsel (!%p1610_p10), %vm419_vm3, %v1054_v29, %v1052_v28  ;;  %v1055_v38 = vsel (!%p1610_p10), %vm419_vm3, %v1053_v19, %v1054_v29  ;;  %1761 = vmatprep.mubr.msk.f32.mxu0 (!%p1610_p10), %vm1919_vm9, %v1920_v34 }
 0x19f   : > { %896 = vst.msk [vmem:[#allocation2 + $0x30] sm:$0xff] %vm553_vm5, %v887_v36  ;;  %1039 = vst.msk [vmem:[#allocation2 + $0x18] sm:$0xff] %vm553_vm5, %v1030_v41  ;;  %v906_v44 = vld [vmem:[#allocation2 + $0x20] sm:$0xff]  ;;  %v1063_v36 = vsel (!%p1610_p10), %vm444_vm4, %v1060_v26, %v1058_v27  ;;  %v1062_v41 = vsel (!%p1610_p10), %vm444_vm4, %v1058_v27, %v1059_v25  ;;  %1808 = vmatpush3.bf16.msk.msra.mxu1 (!%p1610_p10), %vm2011_vm2, %v1798_v33  ;;  %1800 = vmatpush3.bf16.msk.msra.mxu0 (!%p1610_p10), %vm2011_vm2, %v1798_v33 }
 0x1a0   : > { %v860_v46 = vpop.f32.mrb[14].mxu1  ;;  %v1003_v47 = vpop.f32.mrb[14].mxu0  ;;  %1083 = vrot.lane.b32.xlu1 (!%p1610_p10), %v1063_v36, %s1921_s9  ;;  %1079 = vrot.lane.b32.xlu0 (!%p1610_p10), %v1062_v41, %s1921_s9 }
 0x1a1   : > { %v888_v48 = vadd.f32 %v860_v46, %v764_v45  ;;  %v1031_v40 = vadd.f32 %v1003_v47, %v906_v44  ;;  %v1713_v43 = vpop.f32.mrb[15].mxu1  ;;  %v1744_v49 = vpop.f32.mrb[15].mxu0 }
 0x1a2   : > { %v907_v55 = vld [vmem:[#allocation2 + $0x28] sm:$0xff] }
 0x1a3   : > { %897 = vst.msk [vmem:[#allocation2 + $0x38] sm:$0xff] %vm553_vm5, %v888_v48  ;;  %1040 = vst.msk [vmem:[#allocation2 + $0x20] sm:$0xff] %vm553_vm5, %v1031_v40 }
 0x1a4   : > { %v865_v54 = vpop.f32.mrb[16].mxu1  ;;  %v1008_v56 = vpop.f32.mrb[16].mxu0 }
 0x1a5   : > { %v889_v58 = vadd.f32 %v865_v54, %v765_v53  ;;  %v1032_v50 = vadd.f32 %v1008_v56, %v907_v55  ;;  %v1716_v59 = vpop.f32.mrb[17].mxu1  ;;  %v1747_v51 = vpop.f32.mrb[17].mxu0  ;;  %v1095_v55 = vld [vmem:[#allocation2 + $0x8] sm:$0xff] (!%p1610_p10) }
 0x1a6   : > { %v908_v52 = vld [vmem:[#allocation2 + $0x30] sm:$0xff]  ;;  %v1094_v59 = vld [vmem:[#allocation2] sm:$0xff] (!%p1610_p10) }
 0x1a7   : > { %898 = vst.msk [vmem:[#allocation2 + $0x40] sm:$0xff] %vm553_vm5, %v889_v58  ;;  %1041 = vst.msk [vmem:[#allocation2 + $0x28] sm:$0xff] %vm553_vm5, %v1032_v50  ;;  %v1096_v51 = vld [vmem:[#allocation2 + $0x10] sm:$0xff] (!%p1610_p10) }
 0x1a8   : > { %v870_v61 = vpop.f32.mrb[18].mxu1  ;;  %v1013_v57 = vpop.f32.mrb[18].mxu0 }
 0x1a9   : > { %v890_v62 = vadd.f32 %v870_v61, %v766_v60  ;;  %v1033_v63 = vadd.f32 %v1013_v57, %v908_v52  ;;  %v1719_v0 = vpop.f32.mrb[19].mxu1  ;;  %v1750_v1 = vpop.f32.mrb[19].mxu0 }
 0x1aa   : > { %v909_v6 = vld [vmem:[#allocation2 + $0x38] sm:$0xff] }
 0x1ab   : > { %899 = vst.msk [vmem:[#allocation2 + $0x48] sm:$0xff] %vm553_vm5, %v890_v62  ;;  %1042 = vst.msk [vmem:[#allocation2 + $0x30] sm:$0xff] %vm553_vm5, %v1033_v63 }
 0x1ac   : > { %v875_v3 = vpop.f32.mrb[20].mxu1  ;;  %v1018_v8 = vpop.f32.mrb[20].mxu0 }
 0x1ad   : > { %v891_v9 = vadd.f32 %v875_v3, %v767_v2  ;;  %v1034_v7 = vadd.f32 %v1018_v8, %v909_v6  ;;  %v1722_v10 = vpop.f32.mrb[21].mxu1  ;;  %v1753_v11 = vpop.f32.mrb[21].mxu0  ;;  %1048 = sbr.rel (%p1610_p10) target bundleno = 747 (0x2eb), region = 44 }
 0x1ae   : > { %v910_v14 = vld [vmem:[#allocation2 + $0x40] sm:$0xff] }
 0x1af   : > { %900 = vst.msk [vmem:[#allocation2 + $0x50] sm:$0xff] %vm553_vm5, %v891_v9  ;;  %1043 = vst.msk [vmem:[#allocation2 + $0x38] sm:$0xff] %vm553_vm5, %v1034_v7 }
 0x1b0   : > { %v880_v13 = vpop.f32.mrb[22].mxu1  ;;  %v1023_v15 = vpop.f32.mrb[22].mxu0 }
 0x1b1   : > { %v892_v16 = vadd.f32 %v880_v13, %v768_v12  ;;  %v1035_v17 = vadd.f32 %v1023_v15, %v910_v14  ;;  %v1725_v20 = vpop.f32.mrb[23].mxu1  ;;  %v1756_v21 = vpop.f32.mrb[23].mxu0 }
 0x1b3   : > { %901 = vst.msk [vmem:[#allocation2 + $0x58] sm:$0xff] %vm553_vm5, %v892_v16  ;;  %1044 = vst.msk [vmem:[#allocation2 + $0x40] sm:$0xff] %vm553_vm5, %v1035_v17 }
 0x208   : > { %v1070_v39 = vpop.permute.xlu0 %1069 }
 0x209   : > { %v1068_v42 = vpop.permute.xlu1 %1067  ;;  %v1089_v44 = vsel %vm553_vm5, %v1056_v35, %v1070_v39 }
 0x20a   : > { %v1088_v48 = vsel %vm553_vm5, %v1057_v37, %v1068_v42 }
 0x20d   : > { %v1082_v45 = vpop.permute.xlu0 %1081  ;;  %v1072_v46 = vpop.permute.xlu1 %1071 }
 0x20e   : > { %v1092_v47 = vsel %vm566_vm6, %v1089_v44, %v1082_v45  ;;  %v1090_v40 = vsel %vm553_vm5, %v1055_v38, %v1072_v46 }
 0x20f   : > { %1765 = vmatmul.mubr.msk.f32.vlgmr.msra.gmra.mrb[0].mxu1 %vm582_vm7, %v1092_v47 }
 0x210   : > { %1767 = vmatprep.mubr.msk.f32.mxu1 %vm1919_vm9, %v1920_v34 }
 0x212   : > { %v1084_v43 = vpop.permute.xlu1 %1083  ;;  %v1080_v49 = vpop.permute.xlu0 %1079 }
 0x213   : > { %v1093_v53 = vsel %vm566_vm6, %v1090_v40, %v1084_v43  ;;  %v1091_v54 = vsel %vm566_vm6, %v1088_v48, %v1080_v49 }
 0x214   : > { %1762 = vmatmul.mubr.msk.f32.vlgmr.msra.gmra.mrb[0].mxu0 %vm582_vm7, %v1091_v54  ;;  %1768 = vmatmul.mubr.msk.f32.gmra.mrb[2].mxu1 %vm582_vm7, %v1093_v53 }
 0x2e2   : > { %v1182_v56 = vpop.f32.mrb[0].mxu1 }
 0x2e3   : > { %v1192_v58 = vadd.f32 %v1182_v56, %v1095_v55  ;;  %v1766_v50 = vpop.f32.mrb[1].mxu1 }
 0x2e5   : > { %1195 = vst.msk [vmem:[#allocation2 + $0x8] sm:$0xff] %vm553_vm5, %v1192_v58 }
 0x2e7   : > { %v1177_v60 = vpop.f32.mrb[0].mxu0  ;;  %v1187_v61 = vpop.f32.mrb[2].mxu1 }
 0x2e8   : > { %v1191_v52 = vadd.f32 %v1177_v60, %v1094_v59  ;;  %v1193_v57 = vadd.f32 %v1187_v61, %v1096_v51  ;;  %v1763_v62 = vpop.f32.mrb[1].mxu0  ;;  %v1769_v63 = vpop.f32.mrb[3].mxu1 }
 0x2ea   : > { %1194 = vst.msk [vmem:[#allocation2] sm:$0xff] %vm553_vm5, %v1191_v52  ;;  %1196 = vst.msk [vmem:[#allocation2 + $0x10] sm:$0xff] %vm553_vm5, %v1193_v57 }
 0x2eb PF: > { %p1615_p11 = scmp.ge.s32.totalorder %s1893_s18, 3 }
 0x2ec   : > { %v1202_v0 = vld [vmem:[%s2093_s13 + $0x8] sm:$0xff] (!%p1615_p11)  ;;  %v1201_v1 = vld [vmem:[%s2093_s13] sm:$0xff] (!%p1615_p11)  ;;  %v1203_v2 = vld [vmem:[%s2093_s13 + $0x10] sm:$0xff] (!%p1615_p11)  ;;  %s1922_s11 = smov (!%p1615_p11), 4   ;;  %v1923_v12 = vmov (!%p1615_p11), 0.0|0.0   ;;  %vm1924_vm10 = vmmov (!%p1615_p11), 0  }
 0x2ed   : > { %1200 = sbr.rel (%p1615_p11) target bundleno = 1088 (0x440), region = 48  ;;  %1221 = vrot.lane.b32.xlu0 (!%p1615_p11), %v1202_v0, %s1922_s11  ;;  %1219 = vrot.lane.b32.xlu1 (!%p1615_p11), %v1201_v1, %s1922_s11  ;;  %v1211_v3 = vrot.slane (!%p1615_p11), %v1202_v0, 1  ;;  %v1212_v6 = vrot.slane (!%p1615_p11), %v1203_v2, 1  ;;  %v1210_v8 = vrot.slane (!%p1615_p11), %v1201_v1, 1  ;;  %v1204_v9 = vrot.slane (!%p1615_p11), %v1201_v1, 7  ;;  %v1616_v7 = vld [vmem:[%s2452_s3 + $0x20] sm:$0xff] (!%p1615_p11) }
 0x2ee   : > { %v1205_v10 = vrot.slane (!%p1615_p11), %v1202_v0, 7  ;;  %v1206_v11 = vrot.slane (!%p1615_p11), %v1203_v2, 7  ;;  %1809 = vmatprep.subr.bf16.mxu1 (!%p1615_p11), %v1923_v12  ;;  %v1617_v13 = vld [vmem:[%s2452_s3 + $0x28] sm:$0xf] (!%p1615_p11)  ;;  %1801 = vmatprep.subr.bf16.mxu0 (!%p1615_p11), %v1923_v12  ;;  %v1925_v16 = vmov (!%p1615_p11), 0.0   ;;  %s1926_s13 = smov (!%p1615_p11), 8  }
 0x2ef   : > { %v1213_v14 = vsel (!%p1615_p11), %vm444_vm4, %v1211_v3, %v1212_v6  ;;  %v1802_v15 = vpack.c.bf16 (!%p1615_p11), %v1617_v13, %v1616_v7  ;;  %1777 = vmatprep.mubr.msk.f32.mxu1 (!%p1615_p11), %vm1924_vm10, %v1925_v16  ;;  %1774 = vmatprep.mubr.msk.f32.mxu0 (!%p1615_p11), %vm1924_vm10, %v1925_v16  ;;  %v1215_v22 = vsel (!%p1615_p11), %vm444_vm4, %v1212_v6, %v1210_v8  ;;  %v1247_v32 = vld [vmem:[#allocation2 + $0x50] sm:$0xff] (!%p1615_p11)  ;;  %v1246_v37 = vld [vmem:[#allocation2 + $0x48] sm:$0xff] (!%p1615_p11) }
 0x2f0   : > { %v1208_v17 = vsel (!%p1615_p11), %vm419_vm3, %v1204_v9, %v1205_v10  ;;  %v1209_v20 = vsel (!%p1615_p11), %vm419_vm3, %v1206_v11, %v1204_v9  ;;  %v1207_v21 = vsel (!%p1615_p11), %vm419_vm3, %v1205_v10, %v1206_v11  ;;  %v1214_v23 = vsel (!%p1615_p11), %vm444_vm4, %v1210_v8, %v1211_v3 }
 0x2f1   : > { %1233 = vrot.lane.b32.xlu0 (!%p1615_p11), %v1213_v14, %s1926_s13  ;;  %1223 = vrot.lane.b32.xlu1 (!%p1615_p11), %v1203_v2, %s1922_s11  ;;  %v1248_v38 = vld [vmem:[#allocation2 + $0x58] sm:$0xff] (!%p1615_p11) }
 0x2f2   : > { %1810 = vmatpush3.bf16.msk.msra.mxu1 (!%p1615_p11), %vm2011_vm2, %v1802_v15  ;;  %1804 = vmatpush3.bf16.msk.msra.mxu0 (!%p1615_p11), %vm2011_vm2, %v1802_v15 }
 0x2f5   : > { %1235 = vrot.lane.b32.xlu1 %v1215_v22, %s1926_s13  ;;  %1231 = vrot.lane.b32.xlu0 %v1214_v23, %s1926_s13 }
 0x35f   : > { %v1222_v24 = vpop.permute.xlu0 %1221  ;;  %v1220_v25 = vpop.permute.xlu1 %1219 }
 0x360   : > { %v1241_v26 = vsel %vm553_vm5, %v1208_v17, %v1222_v24  ;;  %v1240_v4 = vsel %vm553_vm5, %v1209_v20, %v1220_v25 }
 0x363   : > { %v1234_v27 = vpop.permute.xlu0 %1233  ;;  %v1224_v28 = vpop.permute.xlu1 %1223 }
 0x364   : > { %v1244_v18 = vsel %vm566_vm6, %v1241_v26, %v1234_v27  ;;  %v1242_v19 = vsel %vm553_vm5, %v1207_v21, %v1224_v28 }
 0x365   : > { %1778 = vmatmul.mubr.msk.f32.vlgmr.msra.gmra.mrb[0].mxu1 %vm582_vm7, %v1244_v18 }
 0x366   : > { %1780 = vmatprep.mubr.msk.f32.mxu1 %vm1924_vm10, %v1925_v16 }
 0x367   : > { %v1236_v5 = vpop.permute.xlu1 %1235  ;;  %v1232_v29 = vpop.permute.xlu0 %1231 }
 0x368   : > { %v1245_v30 = vsel %vm566_vm6, %v1242_v19, %v1236_v5  ;;  %v1243_v31 = vsel %vm566_vm6, %v1240_v4, %v1232_v29 }
 0x369   : > { %1775 = vmatmul.mubr.msk.f32.vlgmr.msra.gmra.mrb[0].mxu0 %vm582_vm7, %v1243_v31  ;;  %1781 = vmatmul.mubr.msk.f32.gmra.mrb[2].mxu1 %vm582_vm7, %v1245_v30 }
 0x438   : > { %v1334_v33 = vpop.f32.mrb[0].mxu1 }
 0x439   : > { %v1344_v34 = vadd.f32 %v1334_v33, %v1247_v32  ;;  %v1779_v35 = vpop.f32.mrb[1].mxu1 }
 0x43b   : > { %1347 = vst.msk [vmem:[#allocation2 + $0x50] sm:$0xff] %vm553_vm5, %v1344_v34 }
 0x43c   : > { %v1329_v36 = vpop.f32.mrb[0].mxu0  ;;  %v1339_v41 = vpop.f32.mrb[2].mxu1 }
 0x43d   : > { %v1343_v39 = vadd.f32 %v1329_v36, %v1246_v37  ;;  %v1345_v42 = vadd.f32 %v1339_v41, %v1248_v38  ;;  %v1776_v44 = vpop.f32.mrb[1].mxu0  ;;  %v1782_v45 = vpop.f32.mrb[3].mxu1 }
 0x43f   : > { %1346 = vst.msk [vmem:[#allocation2 + $0x48] sm:$0xff] %vm553_vm5, %v1343_v39  ;;  %1348 = vst.msk [vmem:[#allocation2 + $0x58] sm:$0xff] %vm553_vm5, %v1345_v42 }
 0x440 PF: > { %v1349_v46 = vld [vmem:[#allocation2] sm:$0xff]  ;;  %v1350_v48 = vld [vmem:[#allocation2 + $0x8] sm:$0xff]  ;;  %v1351_v49 = vld [vmem:[#allocation2 + $0x10] sm:$0xff] }
 0x441   : > { %v1622_v47 = vld [vmem:[%s2453_s4] ss:$0 sm:$0xff]  ;;  %v1352_v53 = vld [vmem:[#allocation2 + $0x18] sm:$0xff]  ;;  %v1354_v50 = vld [vmem:[#allocation2 + $0x28] sm:$0xff] }
 0x442   : > { %v1368_v40 = vadd.f32 %v1622_v47, %v1349_v46  ;;  %v1369_v43 = vadd.f32 %v1622_v47, %v1350_v48  ;;  %v1353_v54 = vld [vmem:[#allocation2 + $0x20] sm:$0xff]  ;;  %v1370_v55 = vadd.f32 %v1622_v47, %v1351_v49  ;;  %v1371_v56 = vadd.f32 %v1622_v47, %v1352_v53  ;;  %v1355_v59 = vld [vmem:[#allocation2 + $0x30] sm:$0xff]  ;;  %v1356_v51 = vld [vmem:[#allocation2 + $0x38] sm:$0xff] }
 0x443   : > { %v1372_v58 = vadd.f32 %v1622_v47, %v1353_v54  ;;  %v1373_v52 = vadd.f32 %v1622_v47, %v1354_v50  ;;  %v1374_v57 = vadd.f32 %v1622_v47, %v1355_v59  ;;  %v1357_v62 = vld [vmem:[#allocation2 + $0x40] sm:$0xff]  ;;  %v1359_v0 = vld [vmem:[#allocation2 + $0x50] sm:$0xff]  ;;  %v1375_v6 = vadd.f32 %v1622_v47, %v1356_v51 }
 0x444   : > { %v1380_v60 = vmax.f32 %v1368_v40, 0.0  ;;  %v1381_v61 = vmax.f32 %v1369_v43, 0.0  ;;  %v1382_v1 = vmax.f32 %v1370_v55, 0.0  ;;  %v1383_v2 = vmax.f32 %v1371_v56, 0.0 }
 0x445   : > { %v1384_v3 = vmax.f32 %v1372_v58, 0.0  ;;  %v1385_v9 = vmax.f32 %v1373_v52, 0.0  ;;  %v1386_v7 = vmax.f32 %v1374_v57, 0.0  ;;  %v1376_v10 = vadd.f32 %v1622_v47, %v1357_v62 }
 0x446   : > { %v1358_v63 = vld [vmem:[#allocation2 + $0x48] sm:$0xff]  ;;  %v1360_v8 = vld [vmem:[#allocation2 + $0x58] sm:$0xff]  ;;  %1392 = vst.msk [vmem:[%s2023_s25] sm:$0xff] %vm553_vm5, %v1380_v60  ;;  %1393 = vst.msk [vmem:[%s2023_s25 + $0x8] sm:$0xff] %vm553_vm5, %v1381_v61  ;;  %v1387_v12 = vmax.f32 %v1375_v6, 0.0  ;;  %v1378_v13 = vadd.f32 %v1622_v47, %v1359_v0 }
 0x447   : > { %v1377_v11 = vadd.f32 %v1622_v47, %v1358_v63  ;;  %1394 = vst.msk [vmem:[%s2023_s25 + $0x10] sm:$0xff] %vm553_vm5, %v1382_v1  ;;  %1395 = vst.msk [vmem:[%s2023_s25 + $0x18] sm:$0xff] %vm553_vm5, %v1383_v2  ;;  %v1379_v14 = vadd.f32 %v1622_v47, %v1360_v8  ;;  %v1388_v15 = vmax.f32 %v1376_v10, 0.0 }
 0x448   : > { %1396 = vst.msk [vmem:[%s2023_s25 + $0x20] sm:$0xff] %vm553_vm5, %v1384_v3  ;;  %1397 = vst.msk [vmem:[%s2023_s25 + $0x28] sm:$0xff] %vm553_vm5, %v1385_v9  ;;  %v1390_v17 = vmax.f32 %v1378_v13, 0.0 }
 0x449   : > { %1398 = vst.msk [vmem:[%s2023_s25 + $0x30] sm:$0xff] %vm553_vm5, %v1386_v7  ;;  %v1389_v16 = vmax.f32 %v1377_v11, 0.0  ;;  %1399 = vst.msk [vmem:[%s2023_s25 + $0x38] sm:$0xff] %vm553_vm5, %v1387_v12  ;;  %v1391_v20 = vmax.f32 %v1379_v14, 0.0 }
 0x44a   : > { %1400 = vst.msk [vmem:[%s2023_s25 + $0x40] sm:$0xff] %vm553_vm5, %v1388_v15  ;;  %1402 = vst.msk [vmem:[%s2023_s25 + $0x50] sm:$0xff] %vm553_vm5, %v1390_v17 }
 0x44b   : > { %1401 = vst.msk [vmem:[%s2023_s25 + $0x48] sm:$0xff] %vm553_vm5, %v1389_v16  ;;  %1403 = vst.msk [vmem:[%s2023_s25 + $0x58] sm:$0xff] %vm553_vm5, %v1391_v20 }
 0x44c PF: > { %s15_s22 = sadd.s32 1, %s1909_s22   ;;  %s2458_s18 = smov %s1901_s20 }
 0x44d   : > { %p12_p12 = scmp.ge.s32.totalorder %s15_s22, 10   ;;  %s2459_s19 = smov %s1905_s21 }
 0x44e   : > { %s2460_s20 = smov %s2463_s23  ;;  %s2461_s21 = smov %s2467_s24 }
 0x44f   :  { %14 = sbr.rel (!%p12_p12) target bundleno = 3 (0x3), region = 86 }

</bundles_post_ra>
